<compile_context>
chip_gen: v7x
topology: tpu7x:2x2x1
jax: 0.10.0
libtpu: 0.0.40
codegen_flags: <defaults>
</compile_context>

<pallas_src>
import functools

import jax
import jax.numpy as jnp
from jax.experimental import pallas as pl
from jax.experimental.pallas import tpu as pltpu

# ----------------------------------------------------------------------------
# Model configuration (small demo config; set to 224/768/12/12/3072 for real
# ViT-Base/16).
# ----------------------------------------------------------------------------
BATCH = 2
IMG = 64
PATCH = 16
IN_CHANS = 3
HIDDEN = 128
DEPTH = 2
NUM_HEADS = 4
MLP_DIM = 256
NUM_CLASSES = 500
NUM_CLASSES_PAD = 512          # lane-dense (multiple of 128) classifier output
LN_EPS = 1e-12                 # HF ViT layer_norm_eps

assert HIDDEN % NUM_HEADS == 0
assert IMG % PATCH == 0

_VMEM_LIMIT = 48 << 20         # fits v7x (64 MiB physical per TC)


# ----------------------------------------------------------------------------
# Pallas kernels
# ----------------------------------------------------------------------------
def _apply_act(x, act):
    if act == "gelu":
        # tanh-approximate GELU (EUP tanh path); HF ViT uses erf-GELU — the
        # difference is negligible for randomly initialized weights.
        return jax.nn.gelu(x, approximate=True)
    if act == "relu":
        return jnp.maximum(x, 0.0)
    return x


def _matmul_kernel(a_ref, w_ref, b_ref, o_ref, *, act):
    # bf16 MXU operands, f32 accumulation, f32 epilogue.
    acc = jnp.dot(a_ref[...].astype(jnp.bfloat16), w_ref[...],
                  preferred_element_type=jnp.float32)
    acc = acc + b_ref[...]
    acc = _apply_act(acc, act)
    o_ref[...] = acc.astype(o_ref.dtype)


def _matmul_res_kernel(a_ref, w_ref, b_ref, r_ref, o_ref, *, act):
    acc = jnp.dot(a_ref[...].astype(jnp.bfloat16), w_ref[...],
                  preferred_element_type=jnp.float32)
    acc = acc + b_ref[...] + r_ref[...].astype(jnp.float32)
    acc = _apply_act(acc, act)
    o_ref[...] = acc.astype(o_ref.dtype)


def _layernorm_kernel(x_ref, g_ref, b_ref, o_ref, *, eps):
    x = x_ref[...].astype(jnp.float32)
    mean = jnp.mean(x, axis=-1, keepdims=True)
    xc = x - mean
    var = jnp.mean(xc * xc, axis=-1, keepdims=True)
    inv = jax.lax.rsqrt(var + eps)
    o_ref[...] = (xc * inv * g_ref[...] + b_ref[...]).astype(o_ref.dtype)


def _attention_kernel(q_ref, k_ref, v_ref, o_ref, *, scale):
    # Refs are (S, Dh) for one (batch, head) pair.
    q = q_ref[...].astype(jnp.bfloat16)
    k = k_ref[...].astype(jnp.bfloat16)
    v = v_ref[...].astype(jnp.bfloat16)
    # scores = q @ k^T (contract last dims), f32 accumulation.
    s = jax.lax.dot_general(q, k, (((1,), (1,)), ((), ())),
                            preferred_element_type=jnp.float32) * scale
    s = s - jnp.max(s, axis=-1, keepdims=True)
    p = jnp.exp(s)
    p = p / jnp.sum(p, axis=-1, keepdims=True)
    o = jnp.dot(p.astype(jnp.bfloat16), v, preferred_element_type=jnp.float32)
    o_ref[...] = o.astype(o_ref.dtype)


# ----------------------------------------------------------------------------
# Kernel wrappers
# ----------------------------------------------------------------------------
def fused_matmul(a, w, bias, residual=None, act=None):
    """out = act((a @ w) + bias (+ residual)).  a:(M,K) f32, w:(K,N) bf16."""
    M, K = a.shape
    N = w.shape[1]
    tm = M if M <= 512 else 512          # single block for small M, else tile
    tn = N if N <= 512 else 512
    grid = (pl.cdiv(M, tm), pl.cdiv(N, tn))
    bias2 = bias.reshape(1, N).astype(jnp.float32)

    in_specs = [
        pl.BlockSpec((tm, K), lambda i, j: (i, 0)),    # activation tile
        pl.BlockSpec((K, tn), lambda i, j: (0, j)),    # weight tile (bf16)
        pl.BlockSpec((1, tn), lambda i, j: (0, j)),    # bias
    ]
    args = [a, w, bias2]
    if residual is not None:
        in_specs.append(pl.BlockSpec((tm, tn), lambda i, j: (i, j)))
        args.append(residual)
        kernel = functools.partial(_matmul_res_kernel, act=act)
    else:
        kernel = functools.partial(_matmul_kernel, act=act)

    return pl.pallas_call(
        kernel,
        out_shape=jax.ShapeDtypeStruct((M, N), jnp.float32),
        grid=grid,
        in_specs=in_specs,
        out_specs=pl.BlockSpec((tm, tn), lambda i, j: (i, j)),
        compiler_params=pltpu.CompilerParams(
            dimension_semantics=("parallel", "parallel"),
            vmem_limit_bytes=_VMEM_LIMIT,
        ),
    )(*args)


def layernorm(x, gamma, beta, eps=LN_EPS):
    M, D = x.shape
    tm = M if M <= 1024 else 1024
    return pl.pallas_call(
        functools.partial(_layernorm_kernel, eps=eps),
        out_shape=jax.ShapeDtypeStruct((M, D), jnp.float32),
        grid=(pl.cdiv(M, tm),),
        in_specs=[
            pl.BlockSpec((tm, D), lambda i: (i, 0)),
            pl.BlockSpec((1, D), lambda i: (0, 0)),
            pl.BlockSpec((1, D), lambda i: (0, 0)),
        ],
        out_specs=pl.BlockSpec((tm, D), lambda i: (i, 0)),
        compiler_params=pltpu.CompilerParams(
            dimension_semantics=("parallel",),
            vmem_limit_bytes=_VMEM_LIMIT,
        ),
    )(x,
      gamma.reshape(1, D).astype(jnp.float32),
      beta.reshape(1, D).astype(jnp.float32))


def attention(q, k, v):
    """q, k, v: (B*H, S, Dh) f32 -> softmax(QK^T/sqrt(Dh)) V, same shape."""
    BH, S, Dh = q.shape
    scale = 1.0 / (Dh ** 0.5)
    spec = pl.BlockSpec((None, S, Dh), lambda i: (i, 0, 0))
    return pl.pallas_call(
        functools.partial(_attention_kernel, scale=scale),
        out_shape=jax.ShapeDtypeStruct((BH, S, Dh), jnp.float32),
        grid=(BH,),
        in_specs=[spec, spec, spec],
        out_specs=spec,
        compiler_params=pltpu.CompilerParams(
            dimension_semantics=("parallel",),
            vmem_limit_bytes=_VMEM_LIMIT,
        ),
    )(q, k, v)


# ----------------------------------------------------------------------------
# Model pieces
# ----------------------------------------------------------------------------
def patch_embed(x_nchw, w, b):
    """Conv2d(3, hidden, k=16, s=16) == non-overlapping patch matmul."""
    N, C, H, W = x_nchw.shape
    gh, gw = H // PATCH, W // PATCH
    x = x_nchw.reshape(N, C, gh, PATCH, gw, PATCH)
    x = jnp.transpose(x, (0, 2, 4, 1, 3, 5))          # (N, gh, gw, C, ph, pw)
    patches = x.reshape(N * gh * gw, C * PATCH * PATCH)
    out = fused_matmul(patches, w, b)                 # (N*P, HIDDEN)
    return out.reshape(N, gh * gw, HIDDEN)


def encoder_layer(h, p, B, S):
    """Pre-LN ViT encoder layer. h: (B*S, D) f32."""
    D = h.shape[1]
    Dh = D // NUM_HEADS

    x = layernorm(h, p["ln1_g"], p["ln1_b"])
    qkv = fused_matmul(x, p["w_qkv"], p["b_qkv"])                 # (B*S, 3D)
    qkv = qkv.reshape(B, S, 3, NUM_HEADS, Dh)
    qkv = jnp.transpose(qkv, (2, 0, 3, 1, 4))                     # (3,B,H,S,Dh)
    q = qkv[0].reshape(B * NUM_HEADS, S, Dh)
    k = qkv[1].reshape(B * NUM_HEADS, S, Dh)
    v = qkv[2].reshape(B * NUM_HEADS, S, Dh)
    attn = attention(q, k, v)                                     # (B*H,S,Dh)
    attn = attn.reshape(B, NUM_HEADS, S, Dh)
    attn = jnp.transpose(attn, (0, 2, 1, 3)).reshape(B * S, D)
    h = fused_matmul(attn, p["w_o"], p["b_o"], residual=h)        # +residual

    x = layernorm(h, p["ln2_g"], p["ln2_b"])
    m = fused_matmul(x, p["w_fc1"], p["b_fc1"], act="gelu")
    h = fused_matmul(m, p["w_fc2"], p["b_fc2"], residual=h)       # +residual
    return h


@jax.jit
def vit_forward(params, x_nchw):
    x = x_nchw.astype(jnp.float32)
    N = x.shape[0]

    tok = patch_embed(x, params["patch_w"], params["patch_b"])    # (N, P, D)
    cls = jnp.broadcast_to(params["cls_token"], (N, 1, HIDDEN))
    tok = jnp.concatenate([cls, tok], axis=1) + params["pos_emb"]
    B, S, D = tok.shape

    h = tok.reshape(B * S, D)
    for lp in params["layers"]:
        h = encoder_layer(h, lp, B, S)
    h = layernorm(h, params["ln_g"], params["ln_b"])              # final LN
    h = h.reshape(B, S, D)

    cls_out = h[:, 0, :]                                          # CLS token
    logits = fused_matmul(cls_out, params["fc_w"], params["fc_b"])
    return logits[:, :NUM_CLASSES]                                # (N, 500)


# ----------------------------------------------------------------------------
# Deterministic parameter construction (weights stored kernel-ready:
# (in, out) layout, bf16; biases / LN params in f32).
# ----------------------------------------------------------------------------
def make_vit_params(key):
    P = (IMG // PATCH) ** 2
    keys = iter(jax.random.split(key, 16 + 8 * DEPTH))

    def dense(kk, din, dout):
        return (0.02 * jax.random.normal(kk, (din, dout), jnp.float32)
                ).astype(jnp.bfloat16)

    p = {
        "patch_w": dense(next(keys), IN_CHANS * PATCH * PATCH, HIDDEN),
        "patch_b": jnp.zeros((HIDDEN,), jnp.float32),
        "cls_token": 0.02 * jax.random.normal(next(keys), (1, 1, HIDDEN),
                                              jnp.float32),
        "pos_emb": 0.02 * jax.random.normal(next(keys), (1, P + 1, HIDDEN),
                                            jnp.float32),
    }

    layers = []
    for _ in range(DEPTH):
        layers.append(dict(
            ln1_g=jnp.ones((HIDDEN,), jnp.float32),
            ln1_b=jnp.zeros((HIDDEN,), jnp.float32),
            w_qkv=dense(next(keys), HIDDEN, 3 * HIDDEN),
            b_qkv=jnp.zeros((3 * HIDDEN,), jnp.float32),
            w_o=dense(next(keys), HIDDEN, HIDDEN),
            b_o=jnp.zeros((HIDDEN,), jnp.float32),
            ln2_g=jnp.ones((HIDDEN,), jnp.float32),
            ln2_b=jnp.zeros((HIDDEN,), jnp.float32),
            w_fc1=dense(next(keys), HIDDEN, MLP_DIM),
            b_fc1=jnp.zeros((MLP_DIM,), jnp.float32),
            w_fc2=dense(next(keys), MLP_DIM, HIDDEN),
            b_fc2=jnp.zeros((HIDDEN,), jnp.float32),
        ))
    p["layers"] = layers

    p["ln_g"] = jnp.ones((HIDDEN,), jnp.float32)
    p["ln_b"] = jnp.zeros((HIDDEN,), jnp.float32)

    fc_w = 0.02 * jax.random.normal(next(keys), (HIDDEN, NUM_CLASSES_PAD),
                                    jnp.float32)
    fc_w = fc_w.at[:, NUM_CLASSES:].set(0.0)      # padded classes are inert
    p["fc_w"] = fc_w.astype(jnp.bfloat16)
    p["fc_b"] = jnp.zeros((NUM_CLASSES_PAD,), jnp.float32)
    return p


# ----------------------------------------------------------------------------
if __name__ == "__main__":
    root = jax.random.PRNGKey(0)
    kp, kx, ka, kw, kq, kk, kv, kl = jax.random.split(root, 8)

    # --- sanity check: fused matmul kernel (ragged M, GELU, bf16 dot) -------
    a = jax.random.normal(ka, (34, 96), jnp.float32)
    w = (0.1 * jax.random.normal(kw, (96, 128), jnp.float32)).astype(jnp.bfloat16)
    b = jnp.linspace(-1.0, 1.0, 128, dtype=jnp.float32)
    got = fused_matmul(a, w, b, act="gelu")
    ref = jax.nn.gelu(a @ w.astype(jnp.float32) + b, approximate=True)
    assert bool(jnp.allclose(got, ref, atol=3e-2, rtol=3e-2)), "matmul mismatch"

    # --- sanity check: layernorm kernel -------------------------------------
    xs = jax.random.normal(kl, (34, HIDDEN), jnp.float32)
    gamma = 1.0 + 0.1 * jnp.arange(HIDDEN, dtype=jnp.float32) / HIDDEN
    beta = 0.1 * jnp.ones((HIDDEN,), jnp.float32)
    got = layernorm(xs, gamma, beta)
    mu = xs.mean(-1, keepdims=True)
    var = ((xs - mu) ** 2).mean(-1, keepdims=True)
    ref = (xs - mu) / jnp.sqrt(var + LN_EPS) * gamma + beta
    assert bool(jnp.allclose(got, ref, atol=1e-3, rtol=1e-3)), "layernorm mismatch"

    # --- sanity check: attention kernel --------------------------------------
    S_t, Dh_t = 17, HIDDEN // NUM_HEADS
    q = 0.5 * jax.random.normal(kq, (8, S_t, Dh_t), jnp.float32)
    k = 0.5 * jax.random.normal(kk, (8, S_t, Dh_t), jnp.float32)
    v = 0.5 * jax.random.normal(kv, (8, S_t, Dh_t), jnp.float32)
    got = attention(q, k, v)
    sc = jnp.einsum("bsd,btd->bst", q, k) / (Dh_t ** 0.5)
    ref = jnp.einsum("bst,btd->bsd", jax.nn.softmax(sc, axis=-1), v)
    assert bool(jnp.allclose(got, ref, atol=3e-2, rtol=3e-2)), "attention mismatch"

    # --- full forward pass ---------------------------------------------------
    params = make_vit_params(kp)
    x = jax.random.normal(kx, (BATCH, IN_CHANS, IMG, IMG), jnp.float32)

    logits = jax.block_until_ready(vit_forward(params, x))
    assert logits.shape == (BATCH, NUM_CLASSES), logits.shape
    assert bool(jnp.all(jnp.isfinite(logits)))
    print("KERNEL_OK")
</pallas_src>

<mosaic_0001>
module attributes {stable_mosaic.version = 11 : i64} {
  func.func @_matmul_kernel(%arg0: i32, %arg1: i32, %arg2: memref<34x96xf32, #tpu.memory_space<vmem>>, %arg3: memref<96x128xbf16, #tpu.memory_space<vmem>>, %arg4: memref<1x128xf32, #tpu.memory_space<vmem>>, %arg5: memref<34x128xf32, #tpu.memory_space<vmem>>) attributes {dimension_semantics = [#tpu.dimension_semantics<parallel>, #tpu.dimension_semantics<parallel>], iteration_bounds = array<i64: 1, 1>, scalar_prefetch = 0 : i64, scratch_operands = 0 : i64, tpu.core_type = #tpu.core_type<tc>, window_params = [{transform_indices = @transform_0, window_bounds = array<i64: 34, 96>}, {transform_indices = @transform_1, window_bounds = array<i64: 96, 128>}, {transform_indices = @transform_2, window_bounds = array<i64: 1, 128>}, {transform_indices = @transform_3, window_bounds = array<i64: 34, 128>}]} {
    %c0 = arith.constant 0 : index
    %c0_0 = arith.constant 0 : index
    %0 = vector.load %arg2[%c0, %c0_0] : memref<34x96xf32, #tpu.memory_space<vmem>>, vector<34x96xf32>
    %1 = arith.truncf %0 : vector<34x96xf32> to vector<34x96xbf16>
    %c0_1 = arith.constant 0 : index
    %c0_2 = arith.constant 0 : index
    %2 = vector.load %arg3[%c0_1, %c0_2] : memref<96x128xbf16, #tpu.memory_space<vmem>>, vector<96x128xbf16>
    %cst = arith.constant dense<0.000000e+00> : vector<34x128xf32>
    %3 = tpu.matmul %1, %2, %cst {dimension_numbers = #tpu.dot_dimension_numbers<[1], [0], [0], [1], [0, 0, 1, 1], [], []>} : vector<34x96xbf16>, vector<96x128xbf16>, vector<34x128xf32> -> vector<34x128xf32>
    %c0_3 = arith.constant 0 : index
    %c0_4 = arith.constant 0 : index
    %4 = vector.load %arg4[%c0_3, %c0_4] : memref<1x128xf32, #tpu.memory_space<vmem>>, vector<1x128xf32>
    %5 = vector.broadcast %4 : vector<1x128xf32> to vector<34x128xf32>
    %6 = arith.addf %3, %5 : vector<34x128xf32>
    %7 = arith.mulf %6, %6 : vector<34x128xf32>
    %8 = arith.mulf %6, %7 : vector<34x128xf32>
    %cst_5 = arith.constant 4.471500e-02 : f32
    %9 = vector.broadcast %cst_5 : f32 to vector<34x128xf32>
    %10 = arith.mulf %9, %8 : vector<34x128xf32>
    %11 = arith.addf %6, %10 : vector<34x128xf32>
    %cst_6 = arith.constant 0.797884583 : f32
    %12 = vector.broadcast %cst_6 : f32 to vector<34x128xf32>
    %13 = arith.mulf %12, %11 : vector<34x128xf32>
    %14 = math.tanh %13 : vector<34x128xf32>
    %cst_7 = arith.constant 1.000000e+00 : f32
    %15 = vector.broadcast %cst_7 : f32 to vector<34x128xf32>
    %16 = arith.addf %15, %14 : vector<34x128xf32>
    %cst_8 = arith.constant 5.000000e-01 : f32
    %17 = vector.broadcast %cst_8 : f32 to vector<34x128xf32>
    %18 = arith.mulf %17, %16 : vector<34x128xf32>
    %19 = arith.mulf %6, %18 : vector<34x128xf32>
    %c0_9 = arith.constant 0 : index
    %c0_10 = arith.constant 0 : index
    %20 = vector.load %arg5[%c0_9, %c0_10] : memref<34x128xf32, #tpu.memory_space<vmem>>, vector<34x128xf32>
    tpu.vector_store %arg5[%c0_9, %c0_10], %19 {strides = array<i32>} : memref<34x128xf32, #tpu.memory_space<vmem>>, vector<34x128xf32>,
    return
  }
  func.func @transform_0(%arg0: i32, %arg1: i32) -> (i32, i32) {
    %c0_i32 = arith.constant 0 : i32
    %c0_i32_0 = arith.constant 0 : i32
    return %arg0, %c0_i32 : i32, i32
  }
  func.func @transform_1(%arg0: i32, %arg1: i32) -> (i32, i32) {
    %c0_i32 = arith.constant 0 : i32
    %c0_i32_0 = arith.constant 0 : i32
    return %c0_i32, %arg1 : i32, i32
  }
  func.func @transform_2(%arg0: i32, %arg1: i32) -> (i32, i32) {
    %c0_i32 = arith.constant 0 : i32
    %c0_i32_0 = arith.constant 0 : i32
    return %c0_i32, %arg1 : i32, i32
  }
  func.func @transform_3(%arg0: i32, %arg1: i32) -> (i32, i32) {
    %c0_i32 = arith.constant 0 : i32
    return %arg0, %arg1 : i32, i32
  }
}

</mosaic_0001>

<bundles_post_ra>
// kernel: tpu_custom_call.1
= control target key start
LH: loop header
LB: loop body
LE: loop exit
PB: predicated region body
PF: predicated region fallthrough
CT: control target
= control target key end

     0   :  { %8 = vsyncpa [#allocation3], 0  ;;  %s470_s0 = inlined_call_operand.hbm [shape: f32[34,96], index: 0, kind: input, shape index: {}]   ;;  %s471_s1 = inlined_call_operand.hbm [shape: bf16[96,128], index: 1, kind: input, shape index: {}]   ;;  %s472_s2 = inlined_call_operand.vmem [shape: f32[1,128], index: 2, kind: input, shape index: {}]   ;;  %s473_s3 = inlined_call_operand.hbm [shape: f32[34,128], index: 3, kind: output, shape index: {}]  }
   0x1   :  { %9 = vsyncpa [#allocation6], 0 }
   0x2   :  { %10 = vsyncpa [#allocation4], 0  ;;  %s393_s12 = smov [#allocation2]   ;;  %s321_s16 = scalar_lea.hbm %s470_s0, 640 }
   0x3   :  { %s16_s13 = sshll.u32 %s393_s12, 4  ;;  %p322_p0 = scmp.ne.s32.totalorder %s470_s0, %s321_s16  ;;  %s17_s13 = int_to_ptr.vmem [resolvable:$true] %s16_s13 }
   0x4   :  { %p325_p1 = scmp.lt.u32.totalorder %s321_s16, %s470_s0 }
   0x6   :  { %p327_p2 = pnand %p325_p1, %p322_p0 }
   0x8   :  { %330 = shalt.err (!%p327_p2)
}
   0x9   :  { %s331_s21 = scalar_lea.vmem %s17_s13, 640  ;;  %p336_p4 = scmp.lt.s32.totalorder %s17_s13, %s17_s13 }
   0xa   :  { %p332_p3 = scmp.ne.s32.totalorder %s17_s13, %s331_s21  ;;  %p337_p5 = scmp.lt.s32.totalorder %s331_s21, %s331_s21 }
   0xc   :  { %p338_p6 = por %p337_p5, %p336_p4 }
   0xe   :  { %p339_p7 = pnand %p338_p6, %p332_p3 }
  0x10   :  { %342 = shalt.err (!%p339_p7)
}
  0x11   :  { %s394_s22 = smov 128   ;;  %s395_s23 = smov 8  }
  0x12   :  { %22 = dma.hbm_to_vmem [thread:$0]  %s470_s0, 640, %s17_s13, [#allocation3], %s394_s22, %s394_s22, %s395_s23  }
  0x13   :  { %s396_s26 = smov [#allocation5]   ;;  %s343_s30 = scalar_lea.hbm %s471_s1, 768 }
  0x14   :  { %s28_s27 = sshll.u32 %s396_s26, 4  ;;  %p344_p8 = scmp.ne.s32.totalorder %s471_s1, %s343_s30  ;;  %s29_s27 = int_to_ptr.vmem [resolvable:$true] %s28_s27 }
  0x15   :  { %p347_p9 = scmp.lt.u32.totalorder %s343_s30, %s471_s1 }
  0x17   :  { %p349_p10 = pnand %p347_p9, %p344_p8 }
  0x19   :  { %352 = shalt.err (!%p349_p10)
}
  0x1a   :  { %s353_s8 = scalar_lea.vmem %s29_s27, 768  ;;  %p358_p12 = scmp.lt.s32.totalorder %s29_s27, %s29_s27 }
  0x1b   :  { %p354_p11 = scmp.ne.s32.totalorder %s29_s27, %s353_s8  ;;  %p359_p13 = scmp.lt.s32.totalorder %s353_s8, %s353_s8 }
  0x1d   :  { %p360_p0 = por %p359_p13, %p358_p12 }
  0x1f   :  { %p361_p1 = pnand %p360_p0, %p354_p11 }
  0x21   :  { %364 = shalt.err (!%p361_p1)
}
  0x22   :  { %s397_s0 = smov 64   ;;  %s398_s9 = smov 4  }
  0x23   :  { %34 = dma.hbm_to_vmem [thread:$0]  %s471_s1, 768, %s29_s27, [#allocation6], %s397_s0, %s397_s0, %s398_s9  }
  0x24   :  { %387 = dma.done.wait [#allocation3], 640  }
  0x25   :  { %388 = vsyncadd [#allocation3], 4294966656 }
  0x26   :  { %389 = dma.done.wait [#allocation6], 768  }
  0x27   :  { %390 = vsyncadd [#allocation6], 4294966528  ;;  %v399_v0 = vmov 0.0   ;;  %vm400_vm0 = vmmov 0   ;;  %v305_v1 = vld [vmem:[#allocation5] sm:$0xff]   ;;  %v306_v2 = vld [vmem:[#allocation5 + $0x8] sm:$0xff]  }
  0x28   :  { %260 = vmatprep.subr.bf16.mxu0 %v399_v0  ;;  %284 = vmatprep.subr.bf16.mxu1 %v399_v0  ;;  %v307_v3 = vld [vmem:[#allocation5 + $0x10] sm:$0xff]   ;;  %v308_v4 = vld [vmem:[#allocation5 + $0x18] sm:$0xff]   ;;  %v309_v5 = vld [vmem:[#allocation5 + $0x20] sm:$0xff]   ;;  %vm107_vm1 = vcmask 785408  }
  0x29   :  { %272 = vmatprep.mubr.msk.bf16.mxu0 %vm400_vm0, %v399_v0  ;;  %276 = vmatprep.mubr.msk.bf16.mxu1 %vm400_vm0, %v399_v0  ;;  %v310_v6 = vld [vmem:[#allocation5 + $0x28] sm:$0xff]   ;;  %v44_v7 = vld [vmem:[#allocation2] sm:$0xff]  ;;  %v45_v8 = vld [vmem:[#allocation2 + $0x8] sm:$0xff] }
  0x2a   :  { %261 = vmatpush3.bf16.msra.mxu0 %v305_v1  ;;  %290 = vmatpush3.bf16.msra.mxu1 %v305_v1  ;;  %v46_v9 = vld [vmem:[#allocation2 + $0x10] sm:$0xff]  ;;  %v47_v10 = vld [vmem:[#allocation2 + $0x18] sm:$0xff]  ;;  %v49_v11 = vpack.c.bf16 %v45_v8, %v44_v7  ;;  %v48_v13 = vld [vmem:[#allocation2 + $0x20] sm:$0x3] }
  0x2b   :  { %262 = vmatprep.subr.bf16.mxu0 %v399_v0  ;;  %285 = vmatprep.subr.bf16.mxu1 %v399_v0  ;;  %v50_v12 = vpack.c.bf16 %v47_v10, %v46_v9  ;;  %v51_v14 = vpack.c.bf16 %v48_v13, %v48_v13  ;;  %v241_v15 = vld [vmem:[%s472_s2] ss:$0 sm:$0xff]  ;;  %s401_s2 = smov [#allocation7]  }
  0x2c   :  { %s228_s13 = sshll.u32 %s401_s2, 4  ;;  %s229_s13 = int_to_ptr.vmem [resolvable:$true] %s228_s13 }
  0x2d   :  { %s365_s14 = scalar_lea.vmem %s229_s13, 640  ;;  %p370_p3 = scmp.lt.s32.totalorder %s229_s13, %s229_s13 }
  0x2e   :  { %263 = vmatpush3.bf16.msra.mxu0 %v306_v2  ;;  %291 = vmatpush3.bf16.msra.mxu1 %v306_v2  ;;  %p366_p2 = scmp.ne.s32.totalorder %s229_s13, %s365_s14  ;;  %p371_p4 = scmp.lt.s32.totalorder %s365_s14, %s365_s14 }
  0x2f   :  { %264 = vmatprep.subr.bf16.mxu0 %v399_v0  ;;  %286 = vmatprep.subr.bf16.mxu1 %v399_v0 }
  0x30   :  { %p372_p5 = por %p371_p4, %p370_p3 }
  0x32   :  { %265 = vmatpush3.bf16.msra.mxu0 %v307_v3  ;;  %292 = vmatpush3.bf16.msra.mxu1 %v307_v3  ;;  %p373_p6 = pnand %p372_p5, %p366_p2 }
  0x33   :  { %266 = vmatprep.subr.bf16.mxu0 %v399_v0  ;;  %287 = vmatprep.subr.bf16.mxu1 %v399_v0 }
  0x36   :  { %267 = vmatpush3.bf16.msra.mxu0 %v308_v4  ;;  %293 = vmatpush3.bf16.msra.mxu1 %v308_v4 }
  0x37   :  { %268 = vmatprep.subr.bf16.mxu0 %v399_v0  ;;  %288 = vmatprep.subr.bf16.mxu1 %v399_v0 }
  0x3a   :  { %269 = vmatpush3.bf16.msra.mxu0 %v309_v5  ;;  %294 = vmatpush3.bf16.msra.mxu1 %v309_v5 }
  0x3b   :  { %270 = vmatprep.subr.bf16.mxu0 %v399_v0  ;;  %289 = vmatprep.subr.bf16.mxu1 %v399_v0 }
  0x3e   :  { %271 = vmatpush3.bf16.msra.mxu0 %v310_v6  ;;  %295 = vmatpush3.bf16.msra.mxu1 %v310_v6 }
  0x41   :  { %273 = vmatmul.mubr.msk.bf16.vlgmr.msra.gmra.mrb[0].mxu0 %vm107_vm1, %v49_v11  ;;  %277 = vmatmul.mubr.msk.bf16.vlgmr.msra.gmra.mrb[0].mxu1 %vm107_vm1, %v50_v12 }
  0x42   :  { %280 = vmatprep.mubr.msk.bf16.mxu1 %vm400_vm0, %v399_v0 }
  0x49   :  { %281 = vmatmul.mubr.msk.bf16.gmra.mrb[4].mxu1 %vm107_vm1, %v51_v14 }
 0x114   :  { %v151_v16 = vpop.f32.mrb[0].mxu0  ;;  %v159_v17 = vpop.f32.mrb[0].mxu1 }
 0x115   :  { %v152_v18 = vadd.f32 %v241_v15, %v151_v16  ;;  %v160_v19 = vadd.f32 %v241_v15, %v159_v17  ;;  %v274_v20 = vpop.f32.mrb[1].mxu0  ;;  %v278_v21 = vpop.f32.mrb[1].mxu1 }
 0x116   :  { %v154_v22 = vpop.f32.mrb[2].mxu0  ;;  %v162_v23 = vpop.f32.mrb[2].mxu1 }
 0x117   :  { %v173_v24 = vmul.f32 %v152_v18, %v152_v18  ;;  %v175_v25 = vmul.f32 %v160_v19, %v160_v19  ;;  %v155_v26 = vadd.f32 %v241_v15, %v154_v22  ;;  %v163_v27 = vadd.f32 %v241_v15, %v162_v23  ;;  %v279_v28 = vpop.f32.mrb[3].mxu1  ;;  %v275_v29 = vpop.f32.mrb[3].mxu0 }
 0x119   :  { %v178_v30 = vmul.f32 %v173_v24, %v152_v18  ;;  %v180_v31 = vmul.f32 %v175_v25, %v160_v19  ;;  %v174_v32 = vmul.f32 %v155_v26, %v155_v26  ;;  %v176_v33 = vmul.f32 %v163_v27, %v163_v27 }
 0x11b   :  { %v183_v34 = vmul.f32 0.044715, %v178_v30  ;;  %v185_v35 = vmul.f32 0.044715, %v180_v31  ;;  %v179_v36 = vmul.f32 %v174_v32, %v155_v26  ;;  %v181_v37 = vmul.f32 %v176_v33, %v163_v27 }
 0x11c   :  { %v167_v38 = vpop.f32.mrb[4].mxu1 }
 0x11d   :  { %v188_v39 = vadd.f32 %v183_v34, %v152_v18  ;;  %v190_v40 = vadd.f32 %v185_v35, %v160_v19  ;;  %v184_v41 = vmul.f32 0.044715, %v179_v36  ;;  %v186_v42 = vmul.f32 0.044715, %v181_v37  ;;  %v282_v43 = vpop.f32.mrb[5].mxu1 }
 0x11e   :  { %v168_v44 = vadd.f32 %v241_v15, %v167_v38  ;;  %v170_v45 = vpop.f32.mrb[6].mxu1 }
 0x11f   :  { %v193_v46 = vmul.f32 0.7978846, %v188_v39  ;;  %v195_v47 = vmul.f32 0.7978846, %v190_v40  ;;  %v189_v48 = vadd.f32 %v184_v41, %v155_v26  ;;  %v191_v49 = vadd.f32 %v186_v42, %v163_v27  ;;  %v283_v50 = vpop.f32.mrb[7].mxu1 }
 0x120   :  { %v177_v51 = vmul.f32 %v168_v44, %v168_v44 }
 0x121   :  { %311 = vtanh.f32 %v193_v46  ;;  %v194_v52 = vmul.f32 0.7978846, %v189_v48  ;;  %v196_v53 = vmul.f32 0.7978846, %v191_v49 }
 0x122   :  { %313 = vtanh.f32 %v195_v47  ;;  %v182_v54 = vmul.f32 %v177_v51, %v168_v44 }
 0x123   :  { %315 = vtanh.f32 %v194_v52 }
 0x124   :  { %317 = vtanh.f32 %v196_v53  ;;  %v187_v55 = vmul.f32 0.044715, %v182_v54 }
 0x126   :  { %v192_v56 = vadd.f32 %v187_v55, %v168_v44 }
 0x128   :  { %v197_v57 = vmul.f32 0.7978846, %v192_v56 }
 0x12a   :  { %319 = vtanh.f32 %v197_v57 }
 0x12b   :  { %v312_v58 = vpop.eup %311 }
 0x12c   :  { %v314_v59 = vpop.eup %313  ;;  %v203_v60 = vadd.f32 1.0, %v312_v58 }
 0x12d   :  { %v316_v61 = vpop.eup %315  ;;  %v205_v62 = vadd.f32 1.0, %v314_v59 }
 0x12e   :  { %v318_v63 = vpop.eup %317  ;;  %v208_v0 = vmul.f32 0.5, %v203_v60  ;;  %v204_v1 = vadd.f32 1.0, %v316_v61 }
 0x12f   :  { %v210_v2 = vmul.f32 0.5, %v205_v62  ;;  %v206_v3 = vadd.f32 1.0, %v318_v63 }
 0x130   :  { %v213_v4 = vmul.f32 %v208_v0, %v152_v18  ;;  %v209_v5 = vmul.f32 0.5, %v204_v1 }
 0x131   :  { %v215_v6 = vmul.f32 %v210_v2, %v160_v19  ;;  %v211_v7 = vmul.f32 0.5, %v206_v3 }
 0x132   :  { %218 = vst [vmem:[#allocation7] sm:$0xff] %v213_v4  ;;  %v214_v8 = vmul.f32 %v209_v5, %v155_v26 }
 0x133   :  { %220 = vst [vmem:[#allocation7 + $0x10] sm:$0xff] %v215_v6  ;;  %v216_v9 = vmul.f32 %v211_v7, %v163_v27 }
 0x134   :  { %v320_v10 = vpop.eup %319  ;;  %219 = vst [vmem:[#allocation7 + $0x8] sm:$0xff] %v214_v8 }
 0x135   :  { %221 = vst [vmem:[#allocation7 + $0x18] sm:$0xff] %v216_v9  ;;  %v207_v11 = vadd.f32 1.0, %v320_v10 }
 0x137   :  { %v212_v12 = vmul.f32 0.5, %v207_v11 }
 0x139   :  { %v217_v13 = vmul.f32 %v212_v12, %v168_v44 }
 0x13b   :  { %222 = vst [vmem:[#allocation7 + $0x20] sm:$0x3] %v217_v13 }
 0x13c   :  { %376 = shalt.err (!%p373_p6)
}
 0x13d   :  { %s377_s17 = scalar_lea.hbm %s473_s3, 640 }
 0x13e   :  { %p378_p7 = scmp.ne.s32.totalorder %s473_s3, %s377_s17  ;;  %p381_p8 = scmp.lt.u32.totalorder %s377_s17, %s473_s3 }
 0x140   :  { %p383_p9 = pnand %p381_p8, %p378_p7 }
 0x142   :  { %386 = shalt.err (!%p383_p9)
}
 0x143   :  { %234 = dma.vmem_to_hbm [thread:$0]  %s229_s13, 640, %s473_s3, [#allocation4], %s394_s22, %s394_s22, %s395_s23  }
 0x144   :  { %391 = dma.done.wait [#allocation4], 640  }
 0x145   :  { %392 = vsyncadd [#allocation4], 4294966656 }
 0x146   :  { %238 = vsyncpa [#allocation3], 1 }
 0x147   :  { %239 = vsyncpa [#allocation6], 1 }
 0x148   :  { %240 = vsyncpa [#allocation4], 1 }

</bundles_post_ra>
